<compile_context>
chip_gen: v7x
topology: tpu7x:2x2x1
jax: 0.10.0
libtpu: 0.0.40
codegen_flags: <defaults>
</compile_context>

<pallas_src>
import math

import jax
import jax.numpy as jnp
from jax.experimental import pallas as pl
from jax.experimental.pallas import tpu as pltpu

# Model dims (from the PyTorch module).
INPUT_SIZE = 77
HIDDEN1_SIZE = 39
HIDDEN2_SIZE = 19
HIDDEN_SIZE = 9

PAD = 128                              # lane-aligned padded feature width
MAX_TILE_B = 2048                      # batch rows per grid step (sweepable)
VMEM_LIMIT_BYTES = 32 * 1024 * 1024    # bump v5e's 16 MiB default scoped VMEM

# Packed-parameter slab layout (rows; all 128 lanes wide, bf16).  Offsets are
# 16-aligned so bf16 sublane packing never straddles a block boundary.
W1_OFF = 0                    # rows [0, 9)    : w1, natural K = 9, lanes 0:19 valid
W2_OFF = 16                   # rows [16, 144) : w2, K padded to 128 (rows 0:19 valid), lanes 0:39
W3_OFF = W2_OFF + PAD         # rows [144, 272): w3, K padded to 128 (rows 0:39 valid), lanes 0:77
B_OFF = W3_OFF + PAD          # rows 272/273/274: b1 / b2 / b3 (zero-padded lanes)
SLAB_ROWS = B_OFF + 16        # 288


def _decoder_kernel(x_ref, w_ref, o_ref):
    # Narrow input tile; bf16 operands for the MXU, f32 accumulation.
    x = x_ref[...].astype(jnp.bfloat16)                      # (tile_b, 9)

    w1 = w_ref[W1_OFF:W1_OFF + HIDDEN_SIZE, :]               # (9, 128)   bf16
    w2 = w_ref[W2_OFF:W2_OFF + PAD, :]                       # (128, 128) bf16
    w3 = w_ref[W3_OFF:W3_OFF + PAD, :]                       # (128, 128) bf16
    b = w_ref[B_OFF:B_OFF + 8, :].astype(jnp.float32)        # rows 0..2 = b1,b2,b3

    # Zero-padded weight rows/lanes and tanh(0)=0 make the 128-lane padding
    # exactly neutral at every layer.
    h = jnp.tanh(jnp.dot(x, w1, preferred_element_type=jnp.float32) + b[0:1, :])
    h = jnp.tanh(
        jnp.dot(h.astype(jnp.bfloat16), w2, preferred_element_type=jnp.float32)
        + b[1:2, :]
    )
    h = jnp.tanh(
        jnp.dot(h.astype(jnp.bfloat16), w3, preferred_element_type=jnp.float32)
        + b[2:3, :]
    )
    # Output ref is exact-width (tile_b, 77); masked store of the valid lanes.
    o_ref[...] = h[:, :INPUT_SIZE]


def pack_decoder_params(params):
    """One-time packing (hoisted out of the forward pass): all weights
    ([in, out] orientation) and biases land in a single lane-padded bf16 slab
    so the kernel has exactly one VMEM-resident constant-index operand."""
    slab = jnp.zeros((SLAB_ROWS, PAD), jnp.float32)
    slab = slab.at[W1_OFF:W1_OFF + HIDDEN_SIZE, :HIDDEN2_SIZE].set(params["w1"])
    slab = slab.at[W2_OFF:W2_OFF + HIDDEN2_SIZE, :HIDDEN1_SIZE].set(params["w2"])
    slab = slab.at[W3_OFF:W3_OFF + HIDDEN1_SIZE, :INPUT_SIZE].set(params["w3"])
    slab = slab.at[B_OFF + 0, :HIDDEN2_SIZE].set(params["b1"])
    slab = slab.at[B_OFF + 1, :HIDDEN1_SIZE].set(params["b2"])
    slab = slab.at[B_OFF + 2, :INPUT_SIZE].set(params["b3"])
    return {"w": slab.astype(jnp.bfloat16)}


def _make_x_spec(tile_b, buffered):
    if buffered:
        try:
            return pl.BlockSpec((tile_b, HIDDEN_SIZE), lambda i: (i, 0),
                                pipeline_mode=pl.Buffered(3))
        except TypeError:
            pass
    return pl.BlockSpec((tile_b, HIDDEN_SIZE), lambda i: (i, 0))


def _build_decoder_call(tile_b, n_blocks, buffered):
    bp = tile_b * n_blocks
    return pl.pallas_call(
        _decoder_kernel,
        out_shape=jax.ShapeDtypeStruct((bp, INPUT_SIZE), jnp.float32),
        grid_spec=pltpu.PrefetchScalarGridSpec(
            num_scalar_prefetch=0,
            grid=(n_blocks,),
            in_specs=[
                # Activations: tiled over the batch grid axis.
                _make_x_spec(tile_b, buffered),
                # Packed weights + biases: constant index_map -> VMEM-resident.
                pl.BlockSpec((SLAB_ROWS, PAD), lambda i: (0, 0)),
            ],
            out_specs=pl.BlockSpec((tile_b, INPUT_SIZE), lambda i: (i, 0)),
        ),
        compiler_params=pltpu.CompilerParams(
            dimension_semantics=("parallel",),
            vmem_limit_bytes=VMEM_LIMIT_BYTES,
        ),
    )


def decoder_forward(x, packed):
    """x: [B, HIDDEN_SIZE] float32. packed: output of pack_decoder_params."""
    B = x.shape[0]
    assert x.shape[1] == HIDDEN_SIZE

    # Batch tile: as large as possible (amortizes the ~0.35us/step grid
    # overhead) but capped at ceil(B/2) rounded to 8 so the parallel batch
    # axis always has >= 2 steps for B > 8 (keeps both v7x TensorCores busy).
    half = -(-B // 2)
    tile_b = max(8, min(MAX_TILE_B, ((half + 7) // 8) * 8))
    Bp = -(-B // tile_b) * tile_b
    if Bp != B:
        x = jnp.pad(x, ((0, Bp - B), (0, 0)))
    n_blocks = Bp // tile_b

    try:
        out = _build_decoder_call(tile_b, n_blocks, buffered=True)(x, packed["w"])
    except Exception:
        # pl.Buffered / pipeline_mode unsupported -> default double buffering.
        out = _build_decoder_call(tile_b, n_blocks, buffered=False)(x, packed["w"])

    return out if Bp == B else out[:B]


def _xavier_uniform(key, shape):
    # shape = (out_features, in_features), PyTorch convention.
    fan_out, fan_in = shape
    bound = math.sqrt(6.0 / (fan_in + fan_out))
    return jax.random.uniform(key, shape, jnp.float32, -bound, bound)


def make_decoder_params(key):
    """Mimic the PyTorch init: Decoder weights are (freshly initialized)
    Encoder weights, transposed. All biases are zero."""
    k1, k2, k3 = jax.random.split(key, 3)
    # Encoder weights (PyTorch layout: [out, in]).
    enc_fc1_w = _xavier_uniform(k1, (HIDDEN1_SIZE, INPUT_SIZE))    # (39, 77)
    enc_fc2_w = _xavier_uniform(k2, (HIDDEN2_SIZE, HIDDEN1_SIZE))  # (19, 39)
    enc_fc3_w = _xavier_uniform(k3, (HIDDEN_SIZE, HIDDEN2_SIZE))   # (9, 19)

    # Decoder fcN.weight (PyTorch [out, in]) = encoder weight transposed.
    dec_fc1_w = enc_fc3_w.T  # (19, 9)
    dec_fc2_w = enc_fc2_w.T  # (39, 19)
    dec_fc3_w = enc_fc1_w.T  # (77, 39)

    # Kernel wants [in, out] so it can do x @ W; transpose once more here.
    return {
        "w1": dec_fc1_w.T,  # (9, 19)
        "b1": jnp.zeros((HIDDEN2_SIZE,), jnp.float32),
        "w2": dec_fc2_w.T,  # (19, 39)
        "b2": jnp.zeros((HIDDEN1_SIZE,), jnp.float32),
        "w3": dec_fc3_w.T,  # (39, 77)
        "b3": jnp.zeros((INPUT_SIZE,), jnp.float32),
    }


def decoder_reference(x, params):
    h = jnp.tanh(x @ params["w1"] + params["b1"])
    h = jnp.tanh(h @ params["w2"] + params["b2"])
    return jnp.tanh(h @ params["w3"] + params["b3"])


if __name__ == "__main__":
    key = jax.random.PRNGKey(0)
    k_param, k_x = jax.random.split(key)

    params = make_decoder_params(k_param)
    packed = pack_decoder_params(params)

    # batch=8: single-tile path; batch=13: exercises batch padding + 2-step grid.
    for batch in (8, 13):
        x = jax.random.normal(jax.random.fold_in(k_x, batch),
                              (batch, HIDDEN_SIZE), jnp.float32)
        out = jax.block_until_ready(decoder_forward(x, packed))
        ref = decoder_reference(x, params)
        assert out.shape == (batch, INPUT_SIZE), out.shape
        # bf16 matmul operands (f32 accumulate) -> relaxed tolerance.
        err = float(jnp.max(jnp.abs(out - ref)))
        assert jnp.allclose(out, ref, atol=3e-2, rtol=0.0), f"max abs err {err}"

    print("KERNEL_OK")
</pallas_src>

<mosaic_0001>
module attributes {stable_mosaic.version = 11 : i64} {
  func.func @_decoder_kernel(%arg0: i32, %arg1: memref<8x9xf32, #tpu.memory_space<vmem>>, %arg2: memref<288x128xbf16, #tpu.memory_space<vmem>>, %arg3: memref<8x77xf32, #tpu.memory_space<vmem>>) attributes {dimension_semantics = [#tpu.dimension_semantics<parallel>], iteration_bounds = array<i64: 1>, scalar_prefetch = 0 : i64, scratch_operands = 0 : i64, tpu.core_type = #tpu.core_type<tc>, window_params = [{transform_indices = @transform_0, window_bounds = array<i64: 8, 9>}, {pipeline_mode = #tpu.pipeline_mode<synchronous>, transform_indices = @transform_1, window_bounds = array<i64: 288, 128>}, {transform_indices = @transform_2, window_bounds = array<i64: 8, 77>}]} {
    %c0 = arith.constant 0 : index
    %c0_0 = arith.constant 0 : index
    %0 = vector.load %arg1[%c0, %c0_0] : memref<8x9xf32, #tpu.memory_space<vmem>>, vector<8x9xf32>
    %1 = arith.truncf %0 : vector<8x9xf32> to vector<8x9xbf16>
    %c0_1 = arith.constant 0 : index
    %c0_2 = arith.constant 0 : index
    %2 = vector.load %arg2[%c0_1, %c0_2] : memref<288x128xbf16, #tpu.memory_space<vmem>>, vector<9x128xbf16>
    %c16 = arith.constant 16 : index
    %c0_3 = arith.constant 0 : index
    %3 = vector.load %arg2[%c16, %c0_3] : memref<288x128xbf16, #tpu.memory_space<vmem>>, vector<128x128xbf16>
    %c144 = arith.constant 144 : index
    %c0_4 = arith.constant 0 : index
    %4 = vector.load %arg2[%c144, %c0_4] : memref<288x128xbf16, #tpu.memory_space<vmem>>, vector<128x128xbf16>
    %c272 = arith.constant 272 : index
    %c0_5 = arith.constant 0 : index
    %5 = vector.load %arg2[%c272, %c0_5] : memref<288x128xbf16, #tpu.memory_space<vmem>>, vector<8x128xbf16>
    %6 = arith.extf %5 : vector<8x128xbf16> to vector<8x128xf32>
    %cst = arith.constant dense<0.000000e+00> : vector<8x128xf32>
    %7 = tpu.matmul %1, %2, %cst {dimension_numbers = #tpu.dot_dimension_numbers<[1], [0], [0], [1], [0, 0, 1, 1], [], []>} : vector<8x9xbf16>, vector<9x128xbf16>, vector<8x128xf32> -> vector<8x128xf32>
    %8 = vector.extract_strided_slice %6 {offsets = [0, 0], sizes = [1, 128], strides = [1, 1]} : vector<8x128xf32> to vector<1x128xf32>
    %9 = vector.broadcast %8 : vector<1x128xf32> to vector<8x128xf32>
    %10 = arith.addf %7, %9 : vector<8x128xf32>
    %11 = math.tanh %10 : vector<8x128xf32>
    %12 = arith.truncf %11 : vector<8x128xf32> to vector<8x128xbf16>
    %cst_6 = arith.constant dense<0.000000e+00> : vector<8x128xf32>
    %13 = tpu.matmul %12, %3, %cst_6 {dimension_numbers = #tpu.dot_dimension_numbers<[1], [0], [0], [1], [0, 0, 1, 1], [], []>} : vector<8x128xbf16>, vector<128x128xbf16>, vector<8x128xf32> -> vector<8x128xf32>
    %14 = vector.extract_strided_slice %6 {offsets = [1, 0], sizes = [1, 128], strides = [1, 1]} : vector<8x128xf32> to vector<1x128xf32>
    %15 = vector.broadcast %14 : vector<1x128xf32> to vector<8x128xf32>
    %16 = arith.addf %13, %15 : vector<8x128xf32>
    %17 = math.tanh %16 : vector<8x128xf32>
    %18 = arith.truncf %17 : vector<8x128xf32> to vector<8x128xbf16>
    %cst_7 = arith.constant dense<0.000000e+00> : vector<8x128xf32>
    %19 = tpu.matmul %18, %4, %cst_7 {dimension_numbers = #tpu.dot_dimension_numbers<[1], [0], [0], [1], [0, 0, 1, 1], [], []>} : vector<8x128xbf16>, vector<128x128xbf16>, vector<8x128xf32> -> vector<8x128xf32>
    %20 = vector.extract_strided_slice %6 {offsets = [2, 0], sizes = [1, 128], strides = [1, 1]} : vector<8x128xf32> to vector<1x128xf32>
    %21 = vector.broadcast %20 : vector<1x128xf32> to vector<8x128xf32>
    %22 = arith.addf %19, %21 : vector<8x128xf32>
    %23 = math.tanh %22 : vector<8x128xf32>
    %24 = vector.extract_strided_slice %23 {offsets = [0, 0], sizes = [8, 77], strides = [1, 1]} : vector<8x128xf32> to vector<8x77xf32>
    %c0_8 = arith.constant 0 : index
    %c0_9 = arith.constant 0 : index
    %25 = vector.load %arg3[%c0_8, %c0_9] : memref<8x77xf32, #tpu.memory_space<vmem>>, vector<8x77xf32>
    tpu.vector_store %arg3[%c0_8, %c0_9], %24 {strides = array<i32>} : memref<8x77xf32, #tpu.memory_space<vmem>>, vector<8x77xf32>,
    return
  }
  func.func @transform_0(%arg0: i32) -> (i32, i32) {
    %c0_i32 = arith.constant 0 : i32
    %c0_i32_0 = arith.constant 0 : i32
    return %arg0, %c0_i32 : i32, i32
  }
  func.func @transform_1(%arg0: i32) -> (i32, i32) {
    %c0_i32 = arith.constant 0 : i32
    %c0_i32_0 = arith.constant 0 : i32
    %c0_i32_1 = arith.constant 0 : i32
    return %c0_i32, %c0_i32_0 : i32, i32
  }
  func.func @transform_2(%arg0: i32) -> (i32, i32) {
    %c0_i32 = arith.constant 0 : i32
    %c0_i32_0 = arith.constant 0 : i32
    return %arg0, %c0_i32 : i32, i32
  }
}

</mosaic_0001>

<bundles_post_ra>
// kernel: tpu_custom_call.1
= control target key start
LH: loop header
LB: loop body
LE: loop exit
PB: predicated region body
PF: predicated region fallthrough
CT: control target
= control target key end

     0   :  { %7 = vsyncpa [#allocation3], 0  ;;  %s620_s0 = inlined_call_operand.hbm [shape: f32[8,9], index: 0, kind: input, shape index: {}]   ;;  %s621_s1 = inlined_call_operand.hbm [shape: bf16[288,128], index: 1, kind: input, shape index: {}]   ;;  %s622_s2 = inlined_call_operand.hbm [shape: f32[8,77], index: 2, kind: output, shape index: {}]  }
   0x1   :  { %8 = vsyncpa [#allocation6], 0 }
   0x2   :  { %9 = vsyncpa [#allocation4], 0  ;;  %s531_s9 = smov [#allocation2]   ;;  %s532_s11 = smov [#allocation5]  }
   0x3   :  { %s16_s10 = sshll.u32 %s531_s9, 4  ;;  %s25_s12 = sshll.u32 %s532_s11, 4  ;;  %s17_s10 = int_to_ptr.vmem [resolvable:$true] %s16_s10  ;;  %s554_s12 = int_to_ptr.vmem [resolvable:$true] %s25_s12 }
   0x4   :  { %s459_s15 = scalar_lea.hbm %s620_s0, 128 }
   0x5   :  { %p460_p0 = scmp.ne.s32.totalorder %s620_s0, %s459_s15  ;;  %p463_p1 = scmp.lt.u32.totalorder %s459_s15, %s620_s0 }
   0x7   :  { %p465_p2 = pnand %p463_p1, %p460_p0 }
   0x9   :  { %468 = shalt.err (!%p465_p2)
}
   0xa   :  { %s469_s20 = scalar_lea.vmem %s17_s10, 128  ;;  %p474_p4 = scmp.lt.s32.totalorder %s17_s10, %s17_s10 }
   0xb   :  { %p470_p3 = scmp.ne.s32.totalorder %s17_s10, %s469_s20  ;;  %p475_p5 = scmp.lt.s32.totalorder %s469_s20, %s469_s20 }
   0xd   :  { %p476_p6 = por %p475_p5, %p474_p4 }
   0xf   :  { %p477_p7 = pnand %p476_p6, %p470_p3 }
  0x11   :  { %480 = shalt.err (!%p477_p7)
}
  0x12   :  { %19 = dma.hbm_to_vmem [thread:$0]  %s620_s0, 128, %s17_s10, [#allocation3]  }
  0x13   :  { %s481_s25 = scalar_lea.hbm %s621_s1, 2304 }
  0x14   :  { %p482_p8 = scmp.ne.s32.totalorder %s621_s1, %s481_s25  ;;  %p485_p9 = scmp.lt.u32.totalorder %s481_s25, %s621_s1 }
  0x16   :  { %p487_p10 = pnand %p485_p9, %p482_p8 }
  0x18   :  { %490 = shalt.err (!%p487_p10)
}
  0x19   :  { %s491_s30 = scalar_lea.vmem %s554_s12, 2304  ;;  %p496_p12 = scmp.lt.s32.totalorder %s554_s12, %s554_s12 }
  0x1a   :  { %p492_p11 = scmp.ne.s32.totalorder %s554_s12, %s491_s30  ;;  %p497_p13 = scmp.lt.s32.totalorder %s491_s30, %s491_s30 }
  0x1c   :  { %p498_p0 = por %p497_p13, %p496_p12 }
  0x1e   :  { %p499_p1 = pnand %p498_p0, %p492_p11 }
  0x20   :  { %502 = shalt.err (!%p499_p1)
}
  0x21   :  { %s533_s0 = smov 64   ;;  %s534_s3 = smov 4  }
  0x22   :  { %31 = dma.hbm_to_vmem [thread:$0]  %s621_s1, 2304, %s554_s12, [#allocation6], %s533_s0, %s533_s0, %s534_s3  }
  0x23   :  { %525 = dma.done.wait [#allocation3], 128  }
  0x24   :  { %526 = vsyncadd [#allocation3], 4294967168 }
  0x25   :  { %527 = dma.done.wait [#allocation6], 2304  }
  0x26   :  { %528 = vsyncadd [#allocation6], 4294964992  ;;  %vm90_vm0 = vcmask 1043456   ;;  %v535_v0 = vmov 0.0   ;;  %vm536_vm1 = vmmov 0   ;;  %vm91_vm2 = vcmask 1044480  }
  0x27   :  { %382 = vmatprep.subr.bf16.mxu0 %v535_v0  ;;  %388 = vmatprep.subr.bf16.mxu1 %v535_v0  ;;  %v537_v1 = vmov 65535   ;;  %v436_v4 = vld [vmem:[#allocation5] sm:$0x1f]   ;;  %v39_v5 = vld [vmem:[#allocation2] sm:$0xff]  ;;  %v437_v7 = vld [vmem:[#allocation5 + $0x8] sm:$0xff]   ;;  %vm86_vm3 = vcmask 72704   ;;  %v77_v20 = vlaneseq }
  0x28   :  { %384 = vmatprep.mubr.msk.bf16.mxu0 %vm536_vm1, %v535_v0  ;;  %404 = vmatprep.mubr.msk.bf16.mxu1 %vm536_vm1, %v535_v0  ;;  %v92_v2 = vsel %vm90_vm0, 4294967295, %v537_v1  ;;  %v40_v8 = vpack.c.bf16 %v39_v5, %v39_v5  ;;  %v438_v9 = vld [vmem:[#allocation5 + $0x10] sm:$0xff]   ;;  %v439_v10 = vld [vmem:[#allocation5 + $0x18] sm:$0xff]   ;;  %v440_v11 = vld [vmem:[#allocation5 + $0x20] sm:$0xff]   ;;  %s538_s1 = smov [#allocation7]   ;;  %vm326_vm4 = vcmask 629760  }
  0x29   :  { %v93_v3 = vsel %vm91_vm2, %v92_v2, 0  ;;  %389 = vmatpush3.bf16.msra.mxu1 %v437_v7  ;;  %v441_v12 = vld [vmem:[#allocation5 + $0x28] sm:$0xff]   ;;  %v442_v13 = vld [vmem:[#allocation5 + $0x30] sm:$0xff]   ;;  %v443_v14 = vld [vmem:[#allocation5 + $0x38] sm:$0xff]   ;;  %v78_v21 = vshrl.u32 %v77_v20, 7  ;;  %s334_s6 = sshll.u32 %s538_s1, 4  ;;  %s335_s6 = int_to_ptr.vmem [resolvable:$true] %s334_s6 }
  0x2a   :  { %v95_v6 = vand.u32 %v436_v4, %v93_v3  ;;  %390 = vmatprep.subr.bf16.mxu1 %v535_v0  ;;  %v444_v15 = vld [vmem:[#allocation5 + $0x40] sm:$0xff]   ;;  %v445_v16 = vld [vmem:[#allocation5 + $0x48] sm:$0xff]   ;;  %v446_v17 = vld [vmem:[#allocation5 + $0x50] sm:$0xff]   ;;  %s503_s7 = scalar_lea.vmem %s335_s6, 128  ;;  %p508_p3 = scmp.lt.s32.totalorder %s335_s6, %s335_s6 }
  0x2b   :  { %v447_v18 = vld [vmem:[#allocation5 + $0x58] sm:$0xff]   ;;  %v448_v19 = vld [vmem:[#allocation5 + $0x60] sm:$0xff]   ;;  %v75_v22 = vld [vmem:[#allocation5 + $0x88] sm:$0xf]  ;;  %v79_v24 = vsub.s32 0, %v78_v21  ;;  %v141_v37 = vsub.s32 1, %v78_v21  ;;  %p504_p2 = scmp.ne.s32.totalorder %s335_s6, %s503_s7  ;;  %p509_p4 = scmp.lt.s32.totalorder %s503_s7, %s503_s7 }
  0x2c   :  { %383 = vmatpush3.bf16.msra.mxu0 %v95_v6  ;;  %v76_v23 = vunpack.c.l.bf16 %v75_v22  ;;  %v449_v33 = vld [vmem:[#allocation5 + $0x68] sm:$0xff]   ;;  %v450_v34 = vld [vmem:[#allocation5 + $0x70] sm:$0xff]   ;;  %v451_v35 = vld [vmem:[#allocation5 + $0x78] sm:$0xff]   ;;  %v235_v46 = vsub.s32 2, %v78_v21 }
  0x2d   :  { %408 = vmatprep.subr.bf16.mxu0 %v535_v0  ;;  %391 = vmatpush3.bf16.msra.mxu1 %v438_v9  ;;  %v452_v36 = vld [vmem:[#allocation5 + $0x80] sm:$0xff]   ;;  %p510_p5 = por %p509_p4, %p508_p3 }
  0x2e   :  { %392 = vmatprep.subr.bf16.mxu1 %v535_v0  ;;  %v80_v25 = vrot.slane %v76_v23, %v79_v24  ;;  %v142_v38 = vrot.slane %v76_v23, %v141_v37  ;;  %v236_v47 = vrot.slane %v76_v23, %v235_v46 }
  0x2f   :  { %385 = vmatmul.mubr.msk.bf16.vlgmr.msra.gmra.mrb[0].mxu0 %vm86_vm3, %v40_v8  ;;  %p511_p6 = pnand %p510_p5, %p504_p2 }
  0x30   :  { %424 = vmatprep.mubr.msk.bf16.mxu0 %vm536_vm1, %v535_v0  ;;  %409 = vmatpush3.bf16.msra.mxu0 %v445_v16 }
  0x31   :  { %393 = vmatpush3.bf16.msra.mxu1 %v439_v10  ;;  %410 = vmatprep.subr.bf16.mxu0 %v535_v0 }
  0x32   :  { %394 = vmatprep.subr.bf16.mxu1 %v535_v0 }
  0x34   :  { %411 = vmatpush3.bf16.msra.mxu0 %v446_v17 }
  0x35   :  { %395 = vmatpush3.bf16.msra.mxu1 %v440_v11  ;;  %412 = vmatprep.subr.bf16.mxu0 %v535_v0 }
  0x36   :  { %396 = vmatprep.subr.bf16.mxu1 %v535_v0 }
  0x38   :  { %413 = vmatpush3.bf16.msra.mxu0 %v447_v18 }
  0x39   :  { %397 = vmatpush3.bf16.msra.mxu1 %v441_v12  ;;  %414 = vmatprep.subr.bf16.mxu0 %v535_v0 }
  0x3a   :  { %398 = vmatprep.subr.bf16.mxu1 %v535_v0 }
  0x3c   :  { %415 = vmatpush3.bf16.msra.mxu0 %v448_v19 }
  0x3d   :  { %399 = vmatpush3.bf16.msra.mxu1 %v442_v13  ;;  %416 = vmatprep.subr.bf16.mxu0 %v535_v0 }
  0x3e   :  { %400 = vmatprep.subr.bf16.mxu1 %v535_v0 }
  0x40   :  { %417 = vmatpush3.bf16.msra.mxu0 %v449_v33 }
  0x41   :  { %401 = vmatpush3.bf16.msra.mxu1 %v443_v14  ;;  %418 = vmatprep.subr.bf16.mxu0 %v535_v0 }
  0x42   :  { %402 = vmatprep.subr.bf16.mxu1 %v535_v0 }
  0x44   :  { %419 = vmatpush3.bf16.msra.mxu0 %v450_v34 }
  0x45   :  { %403 = vmatpush3.bf16.msra.mxu1 %v444_v15  ;;  %420 = vmatprep.subr.bf16.mxu0 %v535_v0 }
  0x48   :  { %421 = vmatpush3.bf16.msra.mxu0 %v451_v35 }
  0x49   :  { %422 = vmatprep.subr.bf16.mxu0 %v535_v0 }
  0x4c   :  { %423 = vmatpush3.bf16.msra.mxu0 %v452_v36 }
 0x102   :  { %v131_v26 = vpop.f32.mrb[0].mxu0 }
 0x103   :  { %v132_v27 = vadd.f32 %v131_v26, %v80_v25  ;;  %v386_v28 = vpop.f32.mrb[1].mxu0 }
 0x104   :  { %v134_v29 = vpop.f32.mrb[2].mxu0 }
 0x105   :  { %453 = vtanh.f32 %v132_v27  ;;  %v387_v30 = vpop.f32.mrb[3].mxu0 }
 0x10f   :  { %v454_v31 = vpop.eup %453 }
 0x110   :  { %v138_v32 = vpack.c.bf16 %v454_v31, %v454_v31 }
 0x112   :  { %405 = vmatmul.mubr.bf16.vlgmr.msra.gmra.mrb[0].mxu1 %v138_v32 }
 0x1e5   :  { %v225_v39 = vpop.f32.mrb[0].mxu1 }
 0x1e6   :  { %v226_v40 = vadd.f32 %v225_v39, %v142_v38  ;;  %v406_v41 = vpop.f32.mrb[1].mxu1 }
 0x1e7   :  { %v228_v42 = vpop.f32.mrb[2].mxu1 }
 0x1e8   :  { %455 = vtanh.f32 %v226_v40  ;;  %v407_v43 = vpop.f32.mrb[3].mxu1 }
 0x1f2   :  { %v456_v44 = vpop.eup %455 }
 0x1f3   :  { %v232_v45 = vpack.c.bf16 %v456_v44, %v456_v44 }
 0x1f5   :  { %425 = vmatmul.mubr.bf16.vlgmr.msra.gmra.mrb[4].mxu0 %v232_v45 }
 0x2c8   :  { %v319_v48 = vpop.f32.mrb[4].mxu0 }
 0x2c9   :  { %v320_v49 = vadd.f32 %v319_v48, %v236_v47  ;;  %v426_v50 = vpop.f32.mrb[5].mxu0 }
 0x2ca   :  { %v322_v51 = vpop.f32.mrb[6].mxu0 }
 0x2cb   :  { %457 = vtanh.f32 %v320_v49  ;;  %v427_v52 = vpop.f32.mrb[7].mxu0 }
 0x2d5   :  { %v458_v53 = vpop.eup %457 }
 0x2d6   :  { %327 = vst.msk [vmem:[#allocation7] sm:$0xff] %vm326_vm4, %v458_v53 }
 0x2d7   :  { %514 = shalt.err (!%p511_p6)
}
 0x2d8   :  { %s515_s10 = scalar_lea.hbm %s622_s2, 128 }
 0x2d9   :  { %p516_p7 = scmp.ne.s32.totalorder %s622_s2, %s515_s10  ;;  %p519_p8 = scmp.lt.u32.totalorder %s515_s10, %s622_s2 }
 0x2db   :  { %p521_p9 = pnand %p519_p8, %p516_p7 }
 0x2dd   :  { %524 = shalt.err (!%p521_p9)
}
 0x2de   :  { %337 = dma.vmem_to_hbm [thread:$0]  %s335_s6, 128, %s622_s2, [#allocation4]  }
 0x2df   :  { %529 = dma.done.wait [#allocation4], 128  }
 0x2e0   :  { %530 = vsyncadd [#allocation4], 4294967168 }
 0x2e1   :  { %341 = vsyncpa [#allocation3], 1 }
 0x2e2   :  { %342 = vsyncpa [#allocation6], 1 }
 0x2e3   :  { %343 = vsyncpa [#allocation4], 1 }

</bundles_post_ra>
